<compile_context>
chip_gen: v5e
topology: v5e:2x2
jax: 0.10.0
libtpu: 0.0.40
codegen_flags: <defaults>
</compile_context>

<pallas_src>
import jax
import jax.numpy as jnp
from jax.experimental import pallas as pl
from jax.experimental.pallas import tpu as pltpu

_NEG_INF = -1e30  # finite "minus infinity": avoids NaN from exp(-inf - (-inf))


def _round_up(x, m):
    return ((x + m - 1) // m) * m


def _vmem_limit(block_bytes):
    """Scoped VMEM limit = actual block footprint + compiler headroom, capped
    below the smallest physical VMEM across generations (v7x: 64 MiB)."""
    return int(min(max(block_bytes + 8 * 2**20, 16 * 2**20), 48 * 2**20))


# --------------------------------------------------------------------------
# Kernel 1: fused QKV projection   y = x2 @ W_qkv + b_qkv   (x2 = rows, Hp)
# --------------------------------------------------------------------------
def _qkv_proj_kernel(x_ref, w_ref, b_ref, o_ref):
    y = jnp.dot(x_ref[...], w_ref[...], preferred_element_type=jnp.float32)
    o_ref[...] = (y + b_ref[...]).astype(o_ref.dtype)


# --------------------------------------------------------------------------
# Kernel 2: causal flash attention with online softmax (triangular schedule)
# --------------------------------------------------------------------------
def _flash_causal_kernel(qi_tbl, ki_tbl, q_ref, k_ref, v_ref, bias_ref,
                         o_ref, m_sc, l_sc, acc_sc):
    t = pl.program_id(1)
    qi = qi_tbl[t]
    ki = ki_tbl[t]

    @pl.when(ki == 0)
    def _():
        m_sc[...] = jnp.full_like(m_sc, _NEG_INF)
        l_sc[...] = jnp.zeros_like(l_sc)
        acc_sc[...] = jnp.zeros_like(acc_sc)

    def _scores():
        # (tq, Hp) x (tk, Hp) contracted on Hp ("nt" form — MXU-native,
        # no materialized transpose).
        return jax.lax.dot_general(
            q_ref[0], k_ref[0],
            dimension_numbers=(((1,), (1,)), ((), ())),
            preferred_element_type=jnp.float32)          # (tq, tk) f32

    def _update(s):
        v = v_ref[0]
        m_prev = m_sc[...]                               # (tq, 1)
        m_new = jnp.maximum(m_prev, jnp.max(s, axis=-1, keepdims=True))
        alpha = jnp.exp(m_prev - m_new)
        p = jnp.exp(s - m_new)
        l_sc[...] = alpha * l_sc[...] + jnp.sum(p, axis=-1, keepdims=True)
        acc_sc[...] = alpha * acc_sc[...] + jnp.dot(
            p.astype(v.dtype), v, preferred_element_type=jnp.float32)
        m_sc[...] = m_new

    # Strictly-below-diagonal tile: fully visible keys, no mask work at all.
    @pl.when(ki < qi)
    def _():
        _update(_scores())

    # Diagonal tile: add the resident constant causal bias, update, finalize.
    @pl.when(ki == qi)
    def _():
        _update(_scores() + bias_ref[...])
        # Finalize: l >= 1 always (the row-max key contributes exp(0)=1).
        inv_l = pl.reciprocal(l_sc[...], approx=True)    # EUP slot
        inv_l = inv_l * (2.0 - l_sc[...] * inv_l)        # one Newton step (f32)
        o_ref[0] = (acc_sc[...] * inv_l).astype(o_ref.dtype)


# --------------------------------------------------------------------------
# Wrapper
# --------------------------------------------------------------------------
def causal_attention(x, wq, bq, wk, bk, wv, bv, qkv_dtype=None):
    """x: (B, S, H); weights: (H, H) PyTorch layout (out, in); biases: (H,).

    qkv_dtype: dtype of the q/k/v intermediates between the two kernels.
      Default = x.dtype (bit-accurate f32 path).  Pass jnp.bfloat16 to halve
      inter-kernel HBM traffic and run the attention matmuls at the bf16 MXU
      rate (accumulation stays f32).
    """
    B, S, H = x.shape
    in_dtype = x.dtype
    qkv_dtype = jnp.dtype(in_dtype if qkv_dtype is None else qkv_dtype)

    Hp = _round_up(H, 128)                      # lane-dense hidden dim
    # One tile size for q and kv (keeps the local causal bias valid).  256
    # fills the v6e/v7x 256x256 MXU; rounding base 32 keeps sublane packing
    # legal for f32/bf16/int8 when S is small.
    tile = min(256, _round_up(S, 32))
    Sp = _round_up(S, tile)
    nt = Sp // tile

    # ---- pad inputs / fuse weights (PyTorch (out,in) -> (in,out)) ----
    x_p = jnp.pad(x, ((0, 0), (0, Sp - S), (0, Hp - H)))

    def _prep_w(w):
        return jnp.pad(w.T, ((0, Hp - H), (0, Hp - H)))

    def _prep_b(b):
        return jnp.pad(b, (0, Hp - H))

    w_qkv = jnp.concatenate([_prep_w(wq), _prep_w(wk), _prep_w(wv)], axis=1)
    b_qkv = jnp.concatenate([_prep_b(bq), _prep_b(bk), _prep_b(bv)]).reshape(1, 3 * Hp)

    # ---- Kernel 1: fused QKV projection on flattened rows ----
    Rp = B * Sp
    x2 = x_p.reshape(Rp, Hp)

    tm = tile                                    # row tile; grow while it divides Rp
    while tm * 2 <= 512 and Rp % (tm * 2) == 0:
        tm *= 2

    w_isz = jnp.dtype(in_dtype).itemsize
    # Tile the fused weight along its 3*Hp output dim only if the whole block
    # (double-buffered) would stress VMEM (relevant for v7x's 64 MiB / huge H).
    tn = 3 * Hp if (2 * Hp * 3 * Hp * w_isz) <= 12 * 2**20 else Hp
    n_col = (3 * Hp) // tn
    n_row = Rp // tm

    k1_bytes = (2 * (tm * Hp + Hp * tn + tn) * w_isz
                + 2 * tm * tn * qkv_dtype.itemsize)

    qkv = pl.pallas_call(
        _qkv_proj_kernel,
        out_shape=jax.ShapeDtypeStruct((Rp, 3 * Hp), qkv_dtype),
        grid_spec=pltpu.PrefetchScalarGridSpec(
            num_scalar_prefetch=0,
            grid=(n_col, n_row),                 # weight col-block resident across rows
            in_specs=[
                pl.BlockSpec((tm, Hp), lambda j, i: (i, 0)),     # x rows
                pl.BlockSpec((Hp, tn), lambda j, i: (0, j)),     # W column block
                pl.BlockSpec((1, tn), lambda j, i: (0, j)),      # bias column block
            ],
            out_specs=pl.BlockSpec((tm, tn), lambda j, i: (i, j)),
        ),
        compiler_params=pltpu.CompilerParams(
            dimension_semantics=("parallel", "parallel"),
            vmem_limit_bytes=_vmem_limit(k1_bytes)),
    )(x2, w_qkv, b_qkv)

    qkv3 = qkv.reshape(B, Sp, 3 * Hp)            # free reshape (contiguous)

    # ---- Kernel 2: causal flash attention, triangular grid ----
    # Only the nt*(nt+1)/2 valid (qi, ki<=qi) tiles are visited; qi/ki lookup
    # tables are scalar-prefetched into SMEM and drive the index_maps.
    qi_list, ki_list = [], []
    for q_ in range(nt):
        for k_ in range(q_ + 1):
            qi_list.append(q_)
            ki_list.append(k_)
    n_steps = len(qi_list)
    qi_tbl = jnp.asarray(qi_list, dtype=jnp.int32)
    ki_tbl = jnp.asarray(ki_list, dtype=jnp.int32)

    # Constant causal bias for the diagonal tile (fetched once, stays resident).
    rows = jnp.arange(tile, dtype=jnp.int32)[:, None]
    cols = jnp.arange(tile, dtype=jnp.int32)[None, :]
    diag_bias = jnp.where(cols <= rows, 0.0, _NEG_INF).astype(jnp.float32)

    q_isz = qkv_dtype.itemsize
    k2_bytes = (2 * 3 * tile * Hp * q_isz                 # q/k/v blocks, double-buffered
                + 2 * tile * Hp * jnp.dtype(in_dtype).itemsize   # output block
                + 2 * tile * tile * 4                     # causal bias
                + tile * Hp * 4 + 2 * tile * 4)           # f32 scratch (acc, m, l)

    # TODO(synk): for v7x megacore with very small B, add a leading parallel
    # axis splitting the qi range so both TensorCores get work.
    out_p = pl.pallas_call(
        _flash_causal_kernel,
        out_shape=jax.ShapeDtypeStruct((B, Sp, Hp), in_dtype),
        grid_spec=pltpu.PrefetchScalarGridSpec(
            num_scalar_prefetch=2,
            grid=(B, n_steps),
            in_specs=[
                pl.BlockSpec((1, tile, Hp), lambda b, t, qi, ki: (b, qi[t], 0)),  # Q
                pl.BlockSpec((1, tile, Hp), lambda b, t, qi, ki: (b, ki[t], 1)),  # K
                pl.BlockSpec((1, tile, Hp), lambda b, t, qi, ki: (b, ki[t], 2)),  # V
                pl.BlockSpec((tile, tile), lambda b, t, qi, ki: (0, 0)),          # causal bias
            ],
            out_specs=pl.BlockSpec((1, tile, Hp), lambda b, t, qi, ki: (b, qi[t], 0)),
            scratch_shapes=[
                pltpu.VMEM((tile, 1), jnp.float32),    # running max  m
                pltpu.VMEM((tile, 1), jnp.float32),    # running sum  l
                pltpu.VMEM((tile, Hp), jnp.float32),   # accumulator
            ],
        ),
        compiler_params=pltpu.CompilerParams(
            dimension_semantics=("parallel", "arbitrary"),
            vmem_limit_bytes=_vmem_limit(k2_bytes)),
    )(qi_tbl, ki_tbl, qkv3, qkv3, qkv3, diag_bias)

    return out_p[:, :S, :H]


# --------------------------------------------------------------------------
# Pure-JAX reference mirroring the PyTorch loop (vectorized)
# --------------------------------------------------------------------------
def reference(x, wq, bq, wk, bk, wv, bv):
    q = x @ wq.T + bq
    k = x @ wk.T + bk
    v = x @ wv.T + bv
    scores = jnp.einsum("btd,bsd->bts", q, k)
    S = x.shape[1]
    mask = jnp.tril(jnp.ones((S, S), dtype=bool))
    scores = jnp.where(mask[None], scores, -jnp.inf)
    attn = jax.nn.softmax(scores, axis=-1)
    return jnp.einsum("bts,bsd->btd", attn, v)


if __name__ == "__main__":
    key = jax.random.PRNGKey(0)

    def _make_inputs(key, B, S, H):
        kx, kwq, kbq, kwk, kbk, kwv, kbv = jax.random.split(key, 7)
        x = jax.random.normal(kx, (B, S, H), dtype=jnp.float32)
        bound = 1.0 / (H ** 0.5)
        wq = jax.random.uniform(kwq, (H, H), jnp.float32, -bound, bound)
        bq = jax.random.uniform(kbq, (H,), jnp.float32, -bound, bound)
        wk = jax.random.uniform(kwk, (H, H), jnp.float32, -bound, bound)
        bk = jax.random.uniform(kbk, (H,), jnp.float32, -bound, bound)
        wv = jax.random.uniform(kwv, (H, H), jnp.float32, -bound, bound)
        bv = jax.random.uniform(kbv, (H,), jnp.float32, -bound, bound)
        return x, wq, bq, wk, bk, wv, bv

    # 1) Small shape, f32 path (single triangular step) — tight tolerance.
    B, S, H = 2, 8, 32
    args = _make_inputs(key, B, S, H)
    out = jax.block_until_ready(causal_attention(*args))
    ref = reference(*args)
    assert out.shape == (B, S, H)
    assert jnp.allclose(out, ref, atol=1e-4, rtol=1e-4), "f32 small-shape mismatch"

    # 2) Multi-tile triangular schedule (nt > 1, padded last tile) — f32, tight.
    B2, S2, H2 = 2, 80, 32
    args2 = _make_inputs(jax.random.PRNGKey(1), B2, S2, H2)
    out2 = jax.block_until_ready(causal_attention(*args2))
    ref2 = reference(*args2)
    assert out2.shape == (B2, S2, H2)
    assert jnp.allclose(out2, ref2, atol=1e-4, rtol=1e-4), "f32 multi-tile mismatch"

    # 3) bf16 intermediates path (halved inter-kernel HBM traffic, bf16 MXU).
    out3 = jax.block_until_ready(causal_attention(*args, qkv_dtype=jnp.bfloat16))
    assert jnp.allclose(out3, ref, atol=3e-2, rtol=3e-2), "bf16-intermediate mismatch"

    print("KERNEL_OK")
</pallas_src>

<mosaic_0001>
module attributes {stable_mosaic.version = 11 : i64} {
  func.func @_qkv_proj_kernel(%arg0: i32, %arg1: i32, %arg2: memref<64x128xf32, #tpu.memory_space<vmem>>, %arg3: memref<128x384xf32, #tpu.memory_space<vmem>>, %arg4: memref<1x384xf32, #tpu.memory_space<vmem>>, %arg5: memref<64x384xf32, #tpu.memory_space<vmem>>) attributes {dimension_semantics = [#tpu.dimension_semantics<parallel>, #tpu.dimension_semantics<parallel>], iteration_bounds = array<i64: 1, 1>, scalar_prefetch = 0 : i64, scratch_operands = 0 : i64, tpu.core_type = #tpu.core_type<tc>, window_params = [{transform_indices = @transform_0, window_bounds = array<i64: 64, 128>}, {transform_indices = @transform_1, window_bounds = array<i64: 128, 384>}, {transform_indices = @transform_2, window_bounds = array<i64: 1, 384>}, {transform_indices = @transform_3, window_bounds = array<i64: 64, 384>}]} {
    %c0 = arith.constant 0 : index
    %c0_0 = arith.constant 0 : index
    %0 = vector.load %arg2[%c0, %c0_0] : memref<64x128xf32, #tpu.memory_space<vmem>>, vector<64x128xf32>
    %c0_1 = arith.constant 0 : index
    %c0_2 = arith.constant 0 : index
    %1 = vector.load %arg3[%c0_1, %c0_2] : memref<128x384xf32, #tpu.memory_space<vmem>>, vector<128x384xf32>
    %cst = arith.constant dense<0.000000e+00> : vector<64x384xf32>
    %2 = tpu.matmul %0, %1, %cst {dimension_numbers = #tpu.dot_dimension_numbers<[1], [0], [0], [1], [0, 0, 1, 1], [], []>} : vector<64x128xf32>, vector<128x384xf32>, vector<64x384xf32> -> vector<64x384xf32>
    %c0_3 = arith.constant 0 : index
    %c0_4 = arith.constant 0 : index
    %3 = vector.load %arg4[%c0_3, %c0_4] : memref<1x384xf32, #tpu.memory_space<vmem>>, vector<1x384xf32>
    %4 = vector.broadcast %3 : vector<1x384xf32> to vector<64x384xf32>
    %5 = arith.addf %2, %4 : vector<64x384xf32>
    %c0_5 = arith.constant 0 : index
    %c0_6 = arith.constant 0 : index
    %6 = vector.load %arg5[%c0_5, %c0_6] : memref<64x384xf32, #tpu.memory_space<vmem>>, vector<64x384xf32>
    tpu.vector_store %arg5[%c0_5, %c0_6], %5 {strides = array<i32>} : memref<64x384xf32, #tpu.memory_space<vmem>>, vector<64x384xf32>,
    return
  }
  func.func @transform_0(%arg0: i32, %arg1: i32) -> (i32, i32) {
    %c0_i32 = arith.constant 0 : i32
    %c0_i32_0 = arith.constant 0 : i32
    return %arg1, %c0_i32 : i32, i32
  }
  func.func @transform_1(%arg0: i32, %arg1: i32) -> (i32, i32) {
    %c0_i32 = arith.constant 0 : i32
    %c0_i32_0 = arith.constant 0 : i32
    return %c0_i32, %arg0 : i32, i32
  }
  func.func @transform_2(%arg0: i32, %arg1: i32) -> (i32, i32) {
    %c0_i32 = arith.constant 0 : i32
    %c0_i32_0 = arith.constant 0 : i32
    return %c0_i32, %arg0 : i32, i32
  }
  func.func @transform_3(%arg0: i32, %arg1: i32) -> (i32, i32) {
    %c0_i32 = arith.constant 0 : i32
    return %arg1, %arg0 : i32, i32
  }
}

</mosaic_0001>

<bundles_post_ra>
// kernel: tpu_custom_call.1
= control target key start
LH: loop header
LB: loop body
LE: loop exit
PB: predicated region body
PF: predicated region fallthrough
CT: control target
= control target key end

     0   :  { %8 = vsyncpa [#allocation3], 0  ;;  %s551_s0 = inlined_call_operand.hbm [shape: f32[64,128], index: 0, kind: input, shape index: {}]   ;;  %s552_s1 = inlined_call_operand.hbm [shape: f32[128,384], index: 1, kind: input, shape index: {}]   ;;  %s553_s2 = inlined_call_operand.hbm [shape: f32[1,384], index: 2, kind: input, shape index: {}]   ;;  %s554_s3 = inlined_call_operand.hbm [shape: f32[64,384], index: 3, kind: output, shape index: {}]  }
   0x1   :  { %9 = vsyncpa [#allocation6], 0  ;;  %s28_s14 = sshll.u32 %s552_s1, 4  ;;  %s29_s14 = int_to_ptr.hbm [resolvable:$true] %s28_s14 }
   0x2   :  { %10 = vsyncpa [#allocation4], 0  ;;  %s433_s15 = smov [#allocation5]   ;;  %s15_s19 = sshll.u32 %s551_s0, 4  ;;  %s16_s19 = int_to_ptr.hbm [resolvable:$true] %s15_s19 }
   0x3   :  { %s30_s16 = sshll.u32 %s433_s15, 4  ;;  %s434_s20 = smov 384   ;;  %s31_s16 = int_to_ptr.vmem [resolvable:$true] %s30_s16 }
   0x4   :  { %s435_s21 = smov 24   ;;  %s436_s22 = smov [#allocation2]  }
   0x5   :  { %36 = dma.hbm_to_vmem [thread:$0]  %s29_s14, 6144, %s31_s16, [#allocation6], %s434_s20, %s434_s20, %s435_s21  }
   0x6   :  { %s17_s23 = sshll.u32 %s436_s22, 4  ;;  %s437_s1 = smov 128   ;;  %s18_s23 = int_to_ptr.vmem [resolvable:$true] %s17_s23 }
   0x7   :  { %s438_s24 = smov 8   ;;  %s42_s27 = sshll.u32 %s553_s2, 4  ;;  %s43_s27 = int_to_ptr.hbm [resolvable:$true] %s42_s27 }
   0x8   :  { %23 = dma.hbm_to_vmem [thread:$0]  %s16_s19, 1024, %s18_s23, [#allocation3], %s437_s1, %s437_s1, %s438_s24  }
   0x9   :  { %s439_s28 = smov [#allocation7]  }
   0xa   :  { %s44_s0 = sshll.u32 %s439_s28, 4  ;;  %s45_s0 = int_to_ptr.vmem [resolvable:$true] %s44_s0 }
   0xb   :  { %47 = dma.hbm_to_vmem [thread:$0]  %s43_s27, 48, %s45_s0, [#allocation6]  }
   0xc   :  { %427 = dma.done.wait [#allocation3], 1024  }
   0xd   :  { %428 = vsyncadd [#allocation3], 4294966272 }
   0xe   :  { %429 = dma.done.wait [#allocation6], 6192  }
   0xf   :  { %430 = vsyncadd [#allocation6], 4294961104  ;;  %v115_v0 = vld [vmem:[#allocation5 + $0x178] sm:$0xff]  ;;  %v112_v1 = vld [vmem:[#allocation5 + $0x160] sm:$0xff]  ;;  %s440_s2 = smov [#allocation8]   ;;  %s277_s5 = sshll.u32 %s554_s3, 4  ;;  %s278_s5 = int_to_ptr.hbm [resolvable:$true] %s277_s5 }
  0x10   :  { %206 = vmatpush.msra.mxu2 %v115_v0  ;;  %v109_v2 = vld [vmem:[#allocation5 + $0x148] sm:$0xff]  ;;  %v473_v3 = vld [vmem:[#allocation5 + $0x170] sm:$0xff]  ;;  %v476_v4 = vld [vmem:[#allocation5 + $0x158] sm:$0xff]  ;;  %s275_s29 = sshll.u32 %s440_s2, 4  ;;  %s276_s29 = int_to_ptr.vmem [resolvable:$true] %s275_s29 }
  0x11   :  { %165 = vmatpush.msra.mxu1 %v473_v3  ;;  %v106_v5 = vld [vmem:[#allocation5 + $0x130] sm:$0xff]  ;;  %v478_v6 = vld [vmem:[#allocation5 + $0x140] sm:$0xff]  ;;  %v113_v7 = vld [vmem:[#allocation5 + $0x168] sm:$0xff] }
  0x12   :  { %207 = vmatpush.msra.mxu2 %v112_v1  ;;  %v103_v8 = vld [vmem:[#allocation5 + $0x118] sm:$0xff]  ;;  %v481_v9 = vld [vmem:[#allocation5 + $0x128] sm:$0xff]  ;;  %124 = vmatpush.msra.mxu0 %v113_v7  ;;  %v110_v10 = vld [vmem:[#allocation5 + $0x150] sm:$0xff] }
  0x13   :  { %166 = vmatpush.msra.mxu1 %v476_v4  ;;  %291 = vmatpush.msra.mxu3 %v113_v7  ;;  %v107_v11 = vld [vmem:[#allocation5 + $0x138] sm:$0xff]  ;;  %v100_v12 = vld [vmem:[#allocation5 + $0x100] sm:$0xff]  ;;  %v484_v13 = vld [vmem:[#allocation5 + $0x110] sm:$0xff] }
  0x14   :  { %208 = vmatpush.msra.mxu2 %v109_v2  ;;  %125 = vmatpush.msra.mxu0 %v110_v10  ;;  %v104_v14 = vld [vmem:[#allocation5 + $0x120] sm:$0xff]  ;;  %v97_v15 = vld [vmem:[#allocation5 + $0xe8] sm:$0xff]  ;;  %v487_v16 = vld [vmem:[#allocation5 + $0xf8] sm:$0xff] }
  0x15   :  { %167 = vmatpush.msra.mxu1 %v478_v6  ;;  %292 = vmatpush.msra.mxu3 %v110_v10  ;;  %v101_v17 = vld [vmem:[#allocation5 + $0x108] sm:$0xff]  ;;  %v94_v18 = vld [vmem:[#allocation5 + $0xd0] sm:$0xff]  ;;  %v490_v19 = vld [vmem:[#allocation5 + $0xe0] sm:$0xff] }
  0x16   :  { %209 = vmatpush.msra.mxu2 %v106_v5  ;;  %126 = vmatpush.msra.mxu0 %v107_v11  ;;  %v98_v20 = vld [vmem:[#allocation5 + $0xf0] sm:$0xff]  ;;  %v91_v21 = vld [vmem:[#allocation5 + $0xb8] sm:$0xff]  ;;  %v493_v22 = vld [vmem:[#allocation5 + $0xc8] sm:$0xff] }
  0x17   :  { %168 = vmatpush.msra.mxu1 %v481_v9  ;;  %293 = vmatpush.msra.mxu3 %v107_v11  ;;  %v95_v23 = vld [vmem:[#allocation5 + $0xd8] sm:$0xff]  ;;  %v88_v24 = vld [vmem:[#allocation5 + $0xa0] sm:$0xff]  ;;  %v496_v25 = vld [vmem:[#allocation5 + $0xb0] sm:$0xff] }
  0x18   :  { %210 = vmatpush.msra.mxu2 %v103_v8  ;;  %127 = vmatpush.msra.mxu0 %v104_v14  ;;  %v92_v26 = vld [vmem:[#allocation5 + $0xc0] sm:$0xff]  ;;  %v85_v27 = vld [vmem:[#allocation5 + $0x88] sm:$0xff]  ;;  %v499_v28 = vld [vmem:[#allocation5 + $0x98] sm:$0xff] }
  0x19   :  { %169 = vmatpush.msra.mxu1 %v484_v13  ;;  %294 = vmatpush.msra.mxu3 %v104_v14  ;;  %v89_v29 = vld [vmem:[#allocation5 + $0xa8] sm:$0xff]  ;;  %v82_v30 = vld [vmem:[#allocation5 + $0x70] sm:$0xff]  ;;  %v502_v31 = vld [vmem:[#allocation5 + $0x80] sm:$0xff] }
  0x1a   :  { %211 = vmatpush.msra.mxu2 %v100_v12  ;;  %128 = vmatpush.msra.mxu0 %v101_v17  ;;  %v86_v32 = vld [vmem:[#allocation5 + $0x90] sm:$0xff]  ;;  %v79_v33 = vld [vmem:[#allocation5 + $0x58] sm:$0xff]  ;;  %v505_v34 = vld [vmem:[#allocation5 + $0x68] sm:$0xff] }
  0x1b   :  { %170 = vmatpush.msra.mxu1 %v487_v16  ;;  %295 = vmatpush.msra.mxu3 %v101_v17  ;;  %v83_v35 = vld [vmem:[#allocation5 + $0x78] sm:$0xff]  ;;  %v76_v36 = vld [vmem:[#allocation5 + $0x40] sm:$0xff]  ;;  %v508_v37 = vld [vmem:[#allocation5 + $0x50] sm:$0xff] }
  0x1c   :  { %212 = vmatpush.msra.mxu2 %v97_v15  ;;  %129 = vmatpush.msra.mxu0 %v98_v20  ;;  %v80_v38 = vld [vmem:[#allocation5 + $0x60] sm:$0xff]  ;;  %v73_v39 = vld [vmem:[#allocation5 + $0x28] sm:$0xff]  ;;  %v75_v40 = vld [vmem:[#allocation5 + $0x38] sm:$0xff] }
  0x1d   :  { %171 = vmatpush.msra.mxu1 %v490_v19  ;;  %296 = vmatpush.msra.mxu3 %v98_v20  ;;  %v77_v41 = vld [vmem:[#allocation5 + $0x48] sm:$0xff]  ;;  %v70_v42 = vld [vmem:[#allocation5 + $0x10] sm:$0xff]  ;;  %v72_v43 = vld [vmem:[#allocation5 + $0x20] sm:$0xff] }
  0x1e   :  { %213 = vmatpush.msra.mxu2 %v94_v18  ;;  %130 = vmatpush.msra.mxu0 %v95_v23  ;;  %v60_v44 = vld [vmem:[#allocation2] sm:$0xff]  ;;  %v74_v45 = vld [vmem:[#allocation5 + $0x30] sm:$0xff]  ;;  %v69_v46 = vld [vmem:[#allocation5 + $0x8] sm:$0xff] }
  0x1f   :  { %172 = vmatpush.msra.mxu1 %v493_v22  ;;  %297 = vmatpush.msra.mxu3 %v95_v23  ;;  %v71_v47 = vld [vmem:[#allocation5 + $0x18] sm:$0xff]  ;;  %v68_v48 = vld [vmem:[#allocation5] sm:$0xff]  ;;  %v66_v49 = vld [vmem:[#allocation2 + $0x30] sm:$0xff] }
  0x20   :  { %214 = vmatpush.msra.mxu2 %v91_v21  ;;  %131 = vmatpush.msra.mxu0 %v92_v26  ;;  %v61_v50 = vld [vmem:[#allocation2 + $0x8] sm:$0xff]  ;;  %v67_v51 = vld [vmem:[#allocation2 + $0x38] sm:$0xff]  ;;  %v62_v52 = vld [vmem:[#allocation2 + $0x10] sm:$0xff] }
  0x21   :  { %173 = vmatpush.msra.mxu1 %v496_v25  ;;  %298 = vmatpush.msra.mxu3 %v92_v26  ;;  %v63_v53 = vld [vmem:[#allocation2 + $0x18] sm:$0xff]  ;;  %v64_v54 = vld [vmem:[#allocation2 + $0x20] sm:$0xff]  ;;  %v65_v55 = vld [vmem:[#allocation2 + $0x28] sm:$0xff] }
  0x22   :  { %215 = vmatpush.msra.mxu2 %v88_v24  ;;  %132 = vmatpush.msra.mxu0 %v89_v29  ;;  %v116_v56 = vld [vmem:[#allocation7] sm:$0x7] }
  0x23   :  { %174 = vmatpush.msra.mxu1 %v499_v28  ;;  %299 = vmatpush.msra.mxu3 %v89_v29  ;;  %v525_v57 = vperm.slane %v116_v56, 1  ;;  %v118_v59 = vperm.slane %v116_v56, 0  ;;  %v527_v60 = vperm.slane %v116_v56, 2 }
  0x24   :  { %216 = vmatpush.msra.mxu2 %v85_v27  ;;  %133 = vmatpush.msra.mxu0 %v86_v32 }
  0x25   :  { %175 = vmatpush.msra.mxu1 %v502_v31  ;;  %300 = vmatpush.msra.mxu3 %v86_v32 }
  0x26   :  { %217 = vmatpush.msra.mxu2 %v82_v30  ;;  %134 = vmatpush.msra.mxu0 %v83_v35 }
  0x27   :  { %176 = vmatpush.msra.mxu1 %v505_v34  ;;  %301 = vmatpush.msra.mxu3 %v83_v35 }
  0x28   :  { %218 = vmatpush.msra.mxu2 %v79_v33  ;;  %135 = vmatpush.msra.mxu0 %v80_v38 }
  0x29   :  { %177 = vmatpush.msra.mxu1 %v508_v37  ;;  %302 = vmatpush.msra.mxu3 %v80_v38 }
  0x2a   :  { %219 = vmatpush.msra.mxu2 %v76_v36  ;;  %136 = vmatpush.msra.mxu0 %v77_v41 }
  0x2b   :  { %178 = vmatpush.msra.mxu1 %v75_v40  ;;  %303 = vmatpush.msra.mxu3 %v77_v41 }
  0x2c   :  { %220 = vmatpush.msra.mxu2 %v73_v39  ;;  %137 = vmatpush.msra.mxu0 %v74_v45 }
  0x2d   :  { %179 = vmatpush.msra.mxu1 %v72_v43  ;;  %304 = vmatpush.msra.mxu3 %v74_v45 }
  0x2e   :  { %221 = vmatpush.msra.mxu2 %v70_v42  ;;  %138 = vmatpush.msra.mxu0 %v71_v47 }
  0x2f   :  { %222 = vmatmul.f32.vlgmr.msra.gmra.mxu2 %v60_v44  ;;  %180 = vmatpush.msra.mxu1 %v69_v46 }
  0x30   :  { %181 = vmatmul.f32.vlgmr.msra.gmra.mxu1 %v60_v44  ;;  %305 = vmatpush.msra.mxu3 %v71_v47 }
  0x31   :  { %139 = vmatpush.msra.mxu0 %v68_v48 }
  0x32   :  { %140 = vmatmul.f32.vlgmr.msra.gmra.mxu0 %v60_v44  ;;  %306 = vmatpush.msra.mxu3 %v68_v48 }
  0x33   :  { %158 = vmatmul.f32.vlgmr.msra.gmra.mxu3 %v66_v49 }
  0x34   :  { %307 = vmatpush.msrb.mxu3 %v473_v3 }
  0x36   :  { %308 = vmatpush.msrb.mxu3 %v476_v4 }
  0x37   :  { %225 = vmatmul.f32.gmra.mxu2 %v61_v50 }
  0x38   :  { %184 = vmatmul.f32.gmra.mxu1 %v61_v50  ;;  %309 = vmatpush.msrb.mxu3 %v478_v6 }
  0x3a   :  { %310 = vmatpush.msrb.mxu3 %v481_v9  ;;  %143 = vmatmul.f32.gmra.mxu0 %v61_v50 }
  0x3b   :  { %161 = vmatmul.f32.gmra.mxu3 %v67_v51 }
  0x3c   :  { %311 = vmatpush.msrb.mxu3 %v484_v13 }
  0x3e   :  { %312 = vmatpush.msrb.mxu3 %v487_v16 }
  0x3f   :  { %228 = vmatmul.f32.gmra.mxu2 %v62_v52 }
  0x40   :  { %187 = vmatmul.f32.gmra.mxu1 %v62_v52  ;;  %313 = vmatpush.msrb.mxu3 %v490_v19 }
  0x42   :  { %314 = vmatpush.msrb.mxu3 %v493_v22  ;;  %146 = vmatmul.f32.gmra.mxu0 %v62_v52 }
  0x44   :  { %315 = vmatpush.msrb.mxu3 %v496_v25 }
  0x46   :  { %316 = vmatpush.msrb.mxu3 %v499_v28 }
  0x47   :  { %231 = vmatmul.f32.gmra.mxu2 %v63_v53 }
  0x48   :  { %190 = vmatmul.f32.gmra.mxu1 %v63_v53  ;;  %317 = vmatpush.msrb.mxu3 %v502_v31 }
  0x4a   :  { %318 = vmatpush.msrb.mxu3 %v505_v34  ;;  %149 = vmatmul.f32.gmra.mxu0 %v63_v53 }
  0x4c   :  { %319 = vmatpush.msrb.mxu3 %v508_v37 }
  0x4e   :  { %320 = vmatpush.msrb.mxu3 %v75_v40 }
  0x4f   :  { %234 = vmatmul.f32.gmra.mxu2 %v64_v54 }
  0x50   :  { %193 = vmatmul.f32.gmra.mxu1 %v64_v54  ;;  %321 = vmatpush.msrb.mxu3 %v72_v43 }
  0x52   :  { %322 = vmatpush.msrb.mxu3 %v69_v46  ;;  %152 = vmatmul.f32.gmra.mxu0 %v64_v54 }
  0x53   :  { %202 = vmatmul.f32.vlgmr.msrb.gmra.mxu3 %v67_v51 }
  0x57   :  { %237 = vmatmul.f32.gmra.mxu2 %v65_v55 }
  0x58   :  { %196 = vmatmul.f32.gmra.mxu1 %v65_v55 }
  0x5a   :  { %155 = vmatmul.f32.gmra.mxu0 %v65_v55 }
  0x5f   :  { %240 = vmatmul.f32.gmra.mxu2 %v66_v49 }
  0x60   :  { %199 = vmatmul.f32.gmra.mxu1 %v66_v49 }
  0x67   :  { %243 = vmatmul.f32.gmra.mxu2 %v67_v51 }
  0xad   :  { %v182_v58 = vpop.f32.mrf.mxu1 }
  0xae   :  { %v183_v61 = vadd.f32 %v182_v58, %v525_v57 }
  0xaf   :  { %v141_v62 = vpop.f32.mrf.mxu0 }
  0xb0   :  { %248 = vst [vmem:[#allocation8 + $0x8] sm:$0xff] %v183_v61  ;;  %v142_v0 = vadd.f32 %v141_v62, %v118_v59 }
  0xb2   :  { %v223_v63 = vpop.f32.mrf.mxu2  ;;  %247 = vst [vmem:[#allocation8] sm:$0xff] %v142_v0 }
  0xb3   :  { %v224_v1 = vadd.f32 %v223_v63, %v527_v60 }
  0xb5   :  { %249 = vst [vmem:[#allocation8 + $0x10] sm:$0xff] %v224_v1  ;;  %v185_v2 = vpop.f32.mrf.mxu1 }
  0xb6   :  { %v186_v3 = vadd.f32 %v185_v2, %v525_v57  ;;  %v159_v5 = vpop.f32.mrf.mxu3 }
  0xb7   :  { %v144_v4 = vpop.f32.mrf.mxu0  ;;  %v160_v8 = vadd.f32 %v159_v5, %v118_v59 }
  0xb8   :  { %251 = vst [vmem:[#allocation8 + $0x20] sm:$0xff] %v186_v3  ;;  %v145_v7 = vadd.f32 %v144_v4, %v118_v59 }
  0xb9   :  { %265 = vst [vmem:[#allocation8 + $0x90] sm:$0xff] %v160_v8 }
  0xba   :  { %v226_v6 = vpop.f32.mrf.mxu2  ;;  %250 = vst [vmem:[#allocation8 + $0x18] sm:$0xff] %v145_v7 }
  0xbb   :  { %v227_v9 = vadd.f32 %v226_v6, %v527_v60 }
  0xbd   :  { %252 = vst [vmem:[#allocation8 + $0x28] sm:$0xff] %v227_v9  ;;  %v188_v10 = vpop.f32.mrf.mxu1 }
  0xbe   :  { %v189_v11 = vadd.f32 %v188_v10, %v525_v57  ;;  %v162_v13 = vpop.f32.mrf.mxu3 }
  0xbf   :  { %v147_v12 = vpop.f32.mrf.mxu0  ;;  %v163_v16 = vadd.f32 %v162_v13, %v118_v59 }
  0xc0   :  { %254 = vst [vmem:[#allocation8 + $0x38] sm:$0xff] %v189_v11  ;;  %v148_v15 = vadd.f32 %v147_v12, %v118_v59 }
  0xc1   :  { %268 = vst [vmem:[#allocation8 + $0xa8] sm:$0xff] %v163_v16 }
  0xc2   :  { %v229_v14 = vpop.f32.mrf.mxu2  ;;  %253 = vst [vmem:[#allocation8 + $0x30] sm:$0xff] %v148_v15 }
  0xc3   :  { %v230_v17 = vadd.f32 %v229_v14, %v527_v60 }
  0xc5   :  { %255 = vst [vmem:[#allocation8 + $0x40] sm:$0xff] %v230_v17  ;;  %v191_v18 = vpop.f32.mrf.mxu1 }
  0xc6   :  { %v192_v19 = vadd.f32 %v191_v18, %v525_v57 }
  0xc7   :  { %v150_v20 = vpop.f32.mrf.mxu0 }
  0xc8   :  { %257 = vst [vmem:[#allocation8 + $0x50] sm:$0xff] %v192_v19  ;;  %v151_v22 = vadd.f32 %v150_v20, %v118_v59 }
  0xca   :  { %v232_v21 = vpop.f32.mrf.mxu2  ;;  %256 = vst [vmem:[#allocation8 + $0x48] sm:$0xff] %v151_v22 }
  0xcb   :  { %v233_v23 = vadd.f32 %v232_v21, %v527_v60 }
  0xcd   :  { %258 = vst [vmem:[#allocation8 + $0x58] sm:$0xff] %v233_v23  ;;  %v194_v24 = vpop.f32.mrf.mxu1 }
  0xce   :  { %v195_v25 = vadd.f32 %v194_v24, %v525_v57 }
  0xcf   :  { %v153_v26 = vpop.f32.mrf.mxu0 }
  0xd0   :  { %260 = vst [vmem:[#allocation8 + $0x68] sm:$0xff] %v195_v25  ;;  %v154_v28 = vadd.f32 %v153_v26, %v118_v59 }
  0xd2   :  { %v235_v27 = vpop.f32.mrf.mxu2  ;;  %259 = vst [vmem:[#allocation8 + $0x60] sm:$0xff] %v154_v28 }
  0xd3   :  { %v236_v29 = vadd.f32 %v235_v27, %v527_v60 }
  0xd5   :  { %261 = vst [vmem:[#allocation8 + $0x70] sm:$0xff] %v236_v29  ;;  %v197_v30 = vpop.f32.mrf.mxu1 }
  0xd6   :  { %v198_v31 = vadd.f32 %v197_v30, %v525_v57  ;;  %v203_v32 = vpop.f32.mrf.mxu3 }
  0xd7   :  { %v204_v33 = vadd.f32 %v203_v32, %v525_v57  ;;  %v156_v34 = vpop.f32.mrf.mxu0 }
  0xd8   :  { %263 = vst [vmem:[#allocation8 + $0x80] sm:$0xff] %v198_v31  ;;  %v157_v36 = vadd.f32 %v156_v34, %v118_v59 }
  0xd9   :  { %269 = vst [vmem:[#allocation8 + $0xb0] sm:$0xff] %v204_v33 }
  0xda   :  { %v238_v35 = vpop.f32.mrf.mxu2  ;;  %262 = vst [vmem:[#allocation8 + $0x78] sm:$0xff] %v157_v36 }
  0xdb   :  { %v239_v37 = vadd.f32 %v238_v35, %v527_v60 }
  0xdd   :  { %264 = vst [vmem:[#allocation8 + $0x88] sm:$0xff] %v239_v37  ;;  %v200_v38 = vpop.f32.mrf.mxu1 }
  0xde   :  { %v201_v39 = vadd.f32 %v200_v38, %v525_v57 }
  0xe0   :  { %266 = vst [vmem:[#allocation8 + $0x98] sm:$0xff] %v201_v39 }
  0xe2   :  { %v241_v40 = vpop.f32.mrf.mxu2 }
  0xe3   :  { %v242_v41 = vadd.f32 %v241_v40, %v527_v60 }
  0xe5   :  { %267 = vst [vmem:[#allocation8 + $0xa0] sm:$0xff] %v242_v41 }
  0xea   :  { %v244_v42 = vpop.f32.mrf.mxu2 }
  0xeb   :  { %v245_v43 = vadd.f32 %v244_v42, %v527_v60 }
  0xed   :  { %270 = vst [vmem:[#allocation8 + $0xb8] sm:$0xff] %v245_v43 }
  0xee   :  { %283 = dma.vmem_to_hbm [thread:$0]  %s276_s29, 3072, %s278_s5, [#allocation4], %s434_s20, %s434_s20, %s435_s21  }
  0xef   :  { %431 = dma.done.wait [#allocation4], 3072  }
  0xf0   :  { %432 = vsyncadd [#allocation4], 4294964224 }
  0xf1   :  { %288 = vsyncpa [#allocation3], 1 }
  0xf2   :  { %289 = vsyncpa [#allocation6], 1 }
  0xf3   :  { %290 = vsyncpa [#allocation4], 1 }

</bundles_post_ra>
